<compile_context>
chip_gen: v7x
topology: tpu7x:2x2x1
jax: 0.10.0
libtpu: 0.0.40
codegen_flags: <defaults>
</compile_context>

<pallas_src>
import math
import functools

import jax
import jax.numpy as jnp
from jax.experimental import pallas as pl
from jax.experimental.pallas import tpu as pltpu


def _arcface_kernel(t_ref, x_ref, w_ref, o_ref, *,
                    tn, s, cos_m, sin_m, th, mm, easy_margin):
    cj = pl.program_id(0)                        # class-tile index (outer axis)

    # Cosine directly from the MXU: operands are pre-normalized + pre-cast in
    # the wrapper, canonical (M,K)x(K,N) orientation, f32 accumulation.
    cosine = jnp.dot(x_ref[...], w_ref[...],
                     preferred_element_type=jnp.float32)        # (tb, tn) f32

    # ArcFace margin math — f32 throughout.
    sine = jnp.sqrt(jnp.clip(1.0 - cosine * cosine, 0.0, 1.0))
    phi = cosine * cos_m - sine * sin_m
    if easy_margin:
        phi = jnp.where(cosine > 0.0, phi, cosine)
    else:
        phi = jnp.where(cosine > th, phi, cosine - mm)

    # One-hot select: static iota vs. shifted (tb,1) target column.
    tb = cosine.shape[0]
    col = jax.lax.broadcasted_iota(jnp.int32, (tb, tn), 1)      # static
    t_local = t_ref[...] - cj * tn                              # (tb,1), cheap
    is_target = col == t_local                                  # broadcasts
    o_ref[...] = (jnp.where(is_target, phi, cosine) * s).astype(o_ref.dtype)


def arcface_head(inputs, weights, targets, *, s, m, easy_margin,
                 tn_max=512, tb_max=256, matmul_dtype=jnp.bfloat16,
                 out_dtype=jnp.float32):
    """ArcFace forward. inputs: (B, E) f32, weights: (C, E) f32, targets: (B,) int.

    tn_max: class-tile width (512 fills the MXU N dim on v6e/v7x).
    tb_max: batch-tile height once B exceeds it (256 fills the MXU M cadence).
    matmul_dtype: MXU operand dtype (bf16 fast path; f32 for exact matching).
    out_dtype: logits dtype (f32 matches the PyTorch module; bf16 halves the
               output HBM stream if the downstream CE tolerates it).
    """
    B, E = inputs.shape
    C, E2 = weights.shape
    assert E == E2

    # Class tiling: always lane-dense (multiple of 128), even for small C.
    if C <= tn_max:
        C_pad = pl.cdiv(C, 128) * 128
        tn = C_pad
    else:
        tn = tn_max
        C_pad = pl.cdiv(C, tn) * tn

    # Batch tiling: whole batch in one tile while it fits, else 256-row tiles.
    if B <= tb_max:
        tb, B_pad = B, B
    else:
        tb = tb_max
        B_pad = pl.cdiv(B, tb) * tb

    x = inputs.astype(jnp.float32)
    w = weights.astype(jnp.float32)
    t = targets.reshape(-1).astype(jnp.int32)

    # Hoisted norms folded into the (already needed) operand casts.
    # rsqrt(max(sumsq, eps^2)) == 1 / max(||.||, eps) with eps=1e-12
    # (PyTorch F.normalize semantics).  Zero-padded rows stay exactly zero
    # after the multiply, so padded class columns produce cosine == 0.
    inv_x = jax.lax.rsqrt(
        jnp.maximum(jnp.sum(x * x, axis=1, keepdims=True), jnp.float32(1e-24)))
    inv_w = jax.lax.rsqrt(
        jnp.maximum(jnp.sum(w * w, axis=1, keepdims=True), jnp.float32(1e-24)))
    x_mm = (x * inv_x).astype(matmul_dtype)                     # (B, E)
    # Pre-transpose W to (E, C): canonical MXU orientation, lane-dense class
    # dim; fused with the normalize + cast, done once per forward.
    w_mm = jnp.transpose((w * inv_w).astype(matmul_dtype))      # (E, C)

    if B_pad != B:
        x_mm = jnp.pad(x_mm, ((0, B_pad - B), (0, 0)))
        t = jnp.pad(t, (0, B_pad - B))
    if C_pad != C:
        w_mm = jnp.pad(w_mm, ((0, 0), (0, C_pad - C)))
    t2d = t.reshape(B_pad, 1)

    cos_m = math.cos(m)
    sin_m = math.sin(m)
    th = math.cos(math.pi - m)
    mm = math.sin(math.pi - m) * m

    kernel = functools.partial(
        _arcface_kernel,
        tn=tn, s=float(s), cos_m=cos_m, sin_m=sin_m, th=th, mm=mm,
        easy_margin=bool(easy_margin))

    # Class axis OUTER, batch axis INNER -> weight tile resident across batch
    # tiles, W streams from HBM exactly once.
    n_cj = C_pad // tn
    n_bi = B_pad // tb
    grid = (n_cj, n_bi)

    # v7x: shard the class axis across the two TensorCores (disjoint halves of
    # W per core).  If there is only one class tile, let megacore use batch.
    if n_cj > 1:
        dims = ("parallel", "arbitrary")
    else:
        dims = ("arbitrary", "parallel")

    # VMEM budget: double-buffered tiles + epilogue temporaries, with headroom,
    # capped at v7x's 64 MiB physical VMEM.
    op_sz = jnp.dtype(matmul_dtype).itemsize
    out_sz = jnp.dtype(out_dtype).itemsize
    est = (2 * (tb * E * op_sz + E * tn * op_sz + tb * 4 + tb * tn * out_sz)
           + 8 * tb * tn * 4)
    vmem_limit = int(min(64 * 2**20, max(32 * 2**20, 2 * est)))
    # NOTE: for very large E (>~8K), add a K grid axis ("arbitrary") with a
    # (tb,tn) f32 VMEM accumulator instead of shrinking tn; on v7x an fp8
    # operand path could halve the weight stream again (validate margin
    # threshold accuracy first).

    out = pl.pallas_call(
        kernel,
        out_shape=jax.ShapeDtypeStruct((B_pad, C_pad), out_dtype),
        grid_spec=pltpu.PrefetchScalarGridSpec(
            num_scalar_prefetch=0,
            grid=grid,
            in_specs=[
                pl.BlockSpec((tb, 1), lambda cj, bi: (bi, 0)),   # targets tile
                pl.BlockSpec((tb, E), lambda cj, bi: (bi, 0)),   # x tile (normed bf16)
                pl.BlockSpec((E, tn), lambda cj, bi: (0, cj)),   # W tile, resident over bi
            ],
            out_specs=pl.BlockSpec((tb, tn), lambda cj, bi: (bi, cj)),
        ),
        compiler_params=pltpu.CompilerParams(
            dimension_semantics=dims,
            vmem_limit_bytes=vmem_limit),
    )(t2d, x_mm, w_mm)

    if B_pad != B or C_pad != C:
        out = out[:B, :C]
    return out


def _arcface_ref(inputs, weights, targets, *, s, m, easy_margin):
    """Pure-JAX f32 reference mirroring the PyTorch module."""
    eps = 1e-12
    xn = inputs / jnp.maximum(jnp.linalg.norm(inputs, axis=1, keepdims=True), eps)
    wn = weights / jnp.maximum(jnp.linalg.norm(weights, axis=1, keepdims=True), eps)
    cosine = xn @ wn.T
    sine = jnp.sqrt(jnp.clip(1.0 - cosine ** 2, 0.0, 1.0))
    cos_m, sin_m = math.cos(m), math.sin(m)
    th, mm = math.cos(math.pi - m), math.sin(math.pi - m) * m
    phi = cosine * cos_m - sine * sin_m
    if easy_margin:
        phi = jnp.where(cosine > 0, phi, cosine)
    else:
        phi = jnp.where(cosine > th, phi, cosine - mm)
    one_hot = jax.nn.one_hot(targets, cosine.shape[1], dtype=cosine.dtype)
    return (one_hot * phi + (1.0 - one_hot) * cosine) * s


if __name__ == "__main__":
    # Small shapes consistent with the module: batch=8, embed_size=32, classes=256
    B, E, C = 8, 32, 256
    s_scale, margin, easy_margin = 30.0, 0.5, False

    key = jax.random.PRNGKey(0)
    k_x, k_w, k_t = jax.random.split(key, 3)

    inputs = jax.random.normal(k_x, (B, E), dtype=jnp.float32)

    # xavier_uniform_ init for weights (num_classes, embed_size)
    bound = math.sqrt(6.0 / (C + E))
    weights = jax.random.uniform(k_w, (C, E), minval=-bound, maxval=bound,
                                 dtype=jnp.float32)

    targets = jax.random.randint(k_t, (B,), 0, C, dtype=jnp.int32)

    ref = _arcface_ref(inputs, weights, targets,
                       s=s_scale, m=margin, easy_margin=easy_margin)

    # 1) f32 MXU operands: tight match against the f32 PyTorch-semantics reference.
    out_f32 = arcface_head(inputs, weights, targets,
                           s=s_scale, m=margin, easy_margin=easy_margin,
                           matmul_dtype=jnp.float32)
    out_f32 = jax.block_until_ready(out_f32)
    assert out_f32.shape == (B, C)
    assert jnp.allclose(out_f32, ref, atol=1e-4, rtol=1e-4), "f32 path mismatch"

    # 2) Default bf16 MXU fast path: looser tolerance for operand quantization
    #    (normalized operands are in [-1,1]; cosine error ~1e-2 before s=30).
    out_bf16 = arcface_head(inputs, weights, targets,
                            s=s_scale, m=margin, easy_margin=easy_margin)
    out_bf16 = jax.block_until_ready(out_bf16)
    assert out_bf16.shape == (B, C)
    assert jnp.allclose(out_bf16, ref, atol=0.5, rtol=0.0), "bf16 path mismatch"

    print("KERNEL_OK")
</pallas_src>

<mosaic_0001>
module attributes {stable_mosaic.version = 11 : i64} {
  func.func @_arcface_kernel(%arg0: i32, %arg1: i32, %arg2: memref<8x1xi32, #tpu.memory_space<vmem>>, %arg3: memref<8x32xf32, #tpu.memory_space<vmem>>, %arg4: memref<32x256xf32, #tpu.memory_space<vmem>>, %arg5: memref<8x256xf32, #tpu.memory_space<vmem>>) attributes {dimension_semantics = [#tpu.dimension_semantics<arbitrary>, #tpu.dimension_semantics<parallel>], iteration_bounds = array<i64: 1, 1>, scalar_prefetch = 0 : i64, scratch_operands = 0 : i64, tpu.core_type = #tpu.core_type<tc>, window_params = [{transform_indices = @transform_0, window_bounds = array<i64: 8, 1>}, {transform_indices = @transform_1, window_bounds = array<i64: 8, 32>}, {transform_indices = @transform_2, window_bounds = array<i64: 32, 256>}, {transform_indices = @transform_3, window_bounds = array<i64: 8, 256>}]} {
    %c0 = arith.constant 0 : index
    %c0_0 = arith.constant 0 : index
    %0 = vector.load %arg3[%c0, %c0_0] : memref<8x32xf32, #tpu.memory_space<vmem>>, vector<8x32xf32>
    %c0_1 = arith.constant 0 : index
    %c0_2 = arith.constant 0 : index
    %1 = vector.load %arg4[%c0_1, %c0_2] : memref<32x256xf32, #tpu.memory_space<vmem>>, vector<32x256xf32>
    %cst = arith.constant dense<0.000000e+00> : vector<8x256xf32>
    %2 = tpu.matmul %0, %1, %cst {dimension_numbers = #tpu.dot_dimension_numbers<[1], [0], [0], [1], [0, 0, 1, 1], [], []>} : vector<8x32xf32>, vector<32x256xf32>, vector<8x256xf32> -> vector<8x256xf32>
    %3 = arith.mulf %2, %2 : vector<8x256xf32>
    %cst_3 = arith.constant 1.000000e+00 : f32
    %4 = vector.broadcast %cst_3 : f32 to vector<8x256xf32>
    %5 = arith.subf %4, %3 : vector<8x256xf32>
    %cst_4 = arith.constant 0.000000e+00 : f32
    %cst_5 = arith.constant 1.000000e+00 : f32
    %6 = vector.broadcast %cst_4 : f32 to vector<8x256xf32>
    %7 = arith.maximumf %6, %5 : vector<8x256xf32>
    %8 = vector.broadcast %cst_5 : f32 to vector<8x256xf32>
    %9 = arith.minimumf %8, %7 : vector<8x256xf32>
    %10 = math.sqrt %9 : vector<8x256xf32>
    %cst_6 = arith.constant 0.87758255 : f32
    %11 = vector.broadcast %cst_6 : f32 to vector<8x256xf32>
    %12 = arith.mulf %2, %11 : vector<8x256xf32>
    %cst_7 = arith.constant 0.47942555 : f32
    %13 = vector.broadcast %cst_7 : f32 to vector<8x256xf32>
    %14 = arith.mulf %10, %13 : vector<8x256xf32>
    %15 = arith.subf %12, %14 : vector<8x256xf32>
    %cst_8 = arith.constant -0.87758255 : f32
    %16 = vector.broadcast %cst_8 : f32 to vector<8x256xf32>
    %17 = arith.cmpf ogt, %2, %16 : vector<8x256xf32>
    %cst_9 = arith.constant 0.239712775 : f32
    %18 = vector.broadcast %cst_9 : f32 to vector<8x256xf32>
    %19 = arith.subf %2, %18 : vector<8x256xf32>
    %20 = arith.select %17, %15, %19 : vector<8x256xi1>, vector<8x256xf32>
    %21 = tpu.iota {dimensions = array<i32: 1>} : vector<8x256xi32>
    %c0_10 = arith.constant 0 : index
    %c0_11 = arith.constant 0 : index
    %22 = vector.load %arg2[%c0_10, %c0_11] : memref<8x1xi32, #tpu.memory_space<vmem>>, vector<8x1xi32>
    %c256_i32 = arith.constant 256 : i32
    %23 = arith.muli %arg0, %c256_i32 : i32
    %24 = vector.broadcast %23 : i32 to vector<8x1xi32>
    %25 = arith.subi %22, %24 : vector<8x1xi32>
    %26 = vector.broadcast %25 : vector<8x1xi32> to vector<8x256xi32>
    %27 = arith.cmpi eq, %21, %26 : vector<8x256xi32>
    %28 = arith.select %27, %20, %2 : vector<8x256xi1>, vector<8x256xf32>
    %cst_12 = arith.constant 3.000000e+01 : f32
    %29 = vector.broadcast %cst_12 : f32 to vector<8x256xf32>
    %30 = arith.mulf %28, %29 : vector<8x256xf32>
    %c0_13 = arith.constant 0 : index
    %c0_14 = arith.constant 0 : index
    %31 = vector.load %arg5[%c0_13, %c0_14] : memref<8x256xf32, #tpu.memory_space<vmem>>, vector<8x256xf32>
    tpu.vector_store %arg5[%c0_13, %c0_14], %30 {strides = array<i32>} : memref<8x256xf32, #tpu.memory_space<vmem>>, vector<8x256xf32>,
    return
  }
  func.func @transform_0(%arg0: i32, %arg1: i32) -> (i32, i32) {
    %c0_i32 = arith.constant 0 : i32
    %c0_i32_0 = arith.constant 0 : i32
    return %arg1, %c0_i32 : i32, i32
  }
  func.func @transform_1(%arg0: i32, %arg1: i32) -> (i32, i32) {
    %c0_i32 = arith.constant 0 : i32
    %c0_i32_0 = arith.constant 0 : i32
    return %arg1, %c0_i32 : i32, i32
  }
  func.func @transform_2(%arg0: i32, %arg1: i32) -> (i32, i32) {
    %c0_i32 = arith.constant 0 : i32
    %c0_i32_0 = arith.constant 0 : i32
    return %c0_i32, %arg0 : i32, i32
  }
  func.func @transform_3(%arg0: i32, %arg1: i32) -> (i32, i32) {
    %c0_i32 = arith.constant 0 : i32
    return %arg1, %arg0 : i32, i32
  }
}

</mosaic_0001>

<bundles_post_ra>
// kernel: tpu_custom_call.1
= control target key start
LH: loop header
LB: loop body
LE: loop exit
PB: predicated region body
PF: predicated region fallthrough
CT: control target
= control target key end

     0   :  { %8 = vsyncpa [#allocation3], 0  ;;  %s306_s0 = inlined_call_operand.vmem [shape: s32[8,1], index: 0, kind: input, shape index: {}]   ;;  %s307_s1 = inlined_call_operand.vmem [shape: f32[8,32], index: 1, kind: input, shape index: {}]   ;;  %s308_s2 = inlined_call_operand.hbm [shape: f32[32,256], index: 2, kind: input, shape index: {}]   ;;  %s309_s3 = inlined_call_operand.hbm [shape: f32[8,256], index: 3, kind: output, shape index: {}]  }
   0x1   :  { %9 = vsyncpa [#allocation4], 0  ;;  %s250_s12 = smov [#allocation2]   ;;  %s202_s16 = scalar_lea.hbm %s308_s2, 1024 }
   0x2   :  { %s19_s13 = sshll.u32 %s250_s12, 4  ;;  %p203_p0 = scmp.ne.s32.totalorder %s308_s2, %s202_s16  ;;  %s20_s13 = int_to_ptr.vmem [resolvable:$true] %s19_s13 }
   0x3   :  { %p206_p1 = scmp.lt.u32.totalorder %s202_s16, %s308_s2 }
   0x5   :  { %p208_p2 = pnand %p206_p1, %p203_p0 }
   0x7   :  { %211 = shalt.err (!%p208_p2)
}
   0x8   :  { %s212_s21 = scalar_lea.vmem %s20_s13, 1024  ;;  %p217_p4 = scmp.lt.s32.totalorder %s20_s13, %s20_s13 }
   0x9   :  { %p213_p3 = scmp.ne.s32.totalorder %s20_s13, %s212_s21  ;;  %p218_p5 = scmp.lt.s32.totalorder %s212_s21, %s212_s21 }
   0xb   :  { %p219_p6 = por %p218_p5, %p217_p4 }
   0xd   :  { %p220_p7 = pnand %p219_p6, %p213_p3 }
   0xf   :  { %223 = shalt.err (!%p220_p7)
}
  0x10   :  { %s251_s22 = smov 256   ;;  %s252_s23 = smov 16  }
  0x11   :  { %25 = dma.hbm_to_vmem [thread:$0]  %s308_s2, 1024, %s20_s13, [#allocation3], %s251_s22, %s251_s22, %s252_s23  }
  0x12   :  { %246 = dma.done.wait [#allocation3], 1024  }
  0x13   :  { %247 = vsyncadd [#allocation3], 4294966272  ;;  %v253_v0 = vmov 0.0   ;;  %v254_v1 = vmov 0   ;;  %v31_v2 = vld [vmem:[#allocation2 + $0x8] sm:$0xff]  ;;  %v33_v3 = vld [vmem:[#allocation2 + $0x18] sm:$0xff]  ;;  %v147_v26 = vlaneseq }
  0x14   :  { %106 = vmatprep.mubr.f32.mxu0 %v253_v0  ;;  %197 = vset.pattern.permute.xlu0 %v254_v1  ;;  %v30_v4 = vld [vmem:[#allocation2] sm:$0xff]  ;;  %v183_v5 = vpack.c.bf16 %v33_v3, %v31_v2  ;;  %v32_v6 = vld [vmem:[#allocation2 + $0x10] sm:$0xff]  ;;  %v35_v7 = vld [vmem:[#allocation2 + $0x28] sm:$0xff]  ;;  %vm38_vm0 = vcmask 261120  }
  0x15   :  { %v37_v8 = vld [vmem:[#allocation2 + $0x38] sm:$0xff]  ;;  %v185_v9 = vpack.c.bf16 %v32_v6, %v30_v4  ;;  %v34_v11 = vld [vmem:[#allocation2 + $0x20] sm:$0xff]  ;;  %v36_v12 = vld [vmem:[#allocation2 + $0x30] sm:$0xff]  ;;  %v148_v28 = vand.u32 127, %v147_v26 }
  0x16   :  { %v187_v10 = vpack.c.bf16 %v37_v8, %v35_v7  ;;  %184 = vmatprep.subr.bf16.mxu0 %v183_v5  ;;  %v150_v13 = vld [vmem:[%s306_s0] sm:$0xff]  ;;  %v189_v14 = vpack.c.bf16 %v36_v12, %v34_v11  ;;  %s255_s0 = smov [#allocation5]  }
  0x17   :  { %186 = vmatpush1.bf16.msra.mxu0 %v185_v9  ;;  %155 = vperm.xlu0 %197, %v150_v13   ;;  %v29_v15 = vld [vmem:[%s307_s1] sm:$0xff]  ;;  %v149_v36 = vadd.s32 128, %v148_v28  ;;  %s171_s1 = sshll.u32 %s255_s0, 4  ;;  %s172_s1 = int_to_ptr.vmem [resolvable:$true] %s171_s1 }
  0x18   :  { %188 = vmatprep.subr.bf16.mxu0 %v187_v10  ;;  %s224_s29 = scalar_lea.vmem %s172_s1, 256  ;;  %p229_p9 = scmp.lt.s32.totalorder %s172_s1, %s172_s1 }
  0x19   :  { %p225_p8 = scmp.ne.s32.totalorder %s172_s1, %s224_s29  ;;  %p230_p10 = scmp.lt.s32.totalorder %s224_s29, %s224_s29 }
  0x1b   :  { %190 = vmatpush1.bf16.msra.mxu0 %v189_v14  ;;  %p231_p11 = por %p230_p10, %p229_p9 }
  0x1d   :  { %p232_p12 = pnand %p231_p11, %p225_p8 }
  0x1e   :  { %180 = vmatmul.mubr.msk.f32.vlgmr.msra.gmra.mrb[0].mxu0 %vm38_vm0, %v29_v15 }
  0x96   :  { %v156_v37 = vpop.permute.xlu0 %155 }
  0x97   :  { %vm157_vm5 = vcmp.eq.s32.totalorder %v148_v28, %v156_v37  ;;  %vm158_vm7 = vcmp.eq.s32.totalorder %v149_v36, %v156_v37 }
  0xf1   :  { %v108_v16 = vpop.f32.mrb[0].mxu0 }
  0xf2   :  { %v113_v17 = vmul.f32 %v108_v16, %v108_v16  ;;  %v110_v18 = vpop.f32.mrb[1].mxu0  ;;  %v135_v39 = vmul.f32 0.87758255, %v108_v16  ;;  %v181_v44 = vadd.f32 -0.23971277, %v108_v16 }
  0xf3   :  { %v114_v19 = vmul.f32 %v110_v18, %v110_v18  ;;  %v136_v42 = vmul.f32 0.87758255, %v110_v18  ;;  %v182_v47 = vadd.f32 -0.23971277, %v110_v18  ;;  %vm141_vm6 = vcmp.gt.f32.partialorder %v108_v16, -0.87758255 }
  0xf4   :  { %v115_v20 = vsub.f32 1.0, %v113_v17  ;;  %vm142_vm8 = vcmp.gt.f32.partialorder %v110_v18, -0.87758255 }
  0xf5   :  { %v116_v21 = vsub.f32 1.0, %v114_v19 }
  0xf6   :  { %v117_v22 = vmax.f32 %v115_v20, 0.0 }
  0xf7   :  { %v118_v23 = vmax.f32 %v116_v21, 0.0 }
  0xf8   :  { %v119_v24 = vmin.f32 %v117_v22, 1.0 }
  0xf9   :  { %v120_v25 = vmin.f32 %v118_v23, 1.0 }
  0xfa   :  { %198 = vrsqrt.f32 %v119_v24  ;;  %vm123_vm1 = vcmp.eq.f32.partialorder %v119_v24, inf  ;;  %v126_v32 = vand.u32 2147483648, %v119_v24  ;;  %vm125_vm3 = vcmp.eq.f32.partialorder %v119_v24, 0.0 }
  0xfb   :  { %200 = vrsqrt.f32 %v120_v25  ;;  %vm130_vm2 = vcmp.eq.f32.partialorder %v120_v25, inf  ;;  %v133_v33 = vand.u32 2147483648, %v120_v25  ;;  %vm132_vm4 = vcmp.eq.f32.partialorder %v120_v25, 0.0 }
 0x104   :  { %v199_v27 = vpop.eup %198 }
 0x105   :  { %v201_v29 = vpop.eup %200  ;;  %v122_v30 = vmul.f32 %v199_v27, %v119_v24 }
 0x106   :  { %v129_v31 = vmul.f32 %v201_v29, %v120_v25 }
 0x107   :  { %v124_v34 = vsel %vm123_vm1, %v119_v24, %v122_v30 }
 0x108   :  { %v131_v35 = vsel %vm130_vm2, %v120_v25, %v129_v31  ;;  %v127_v38 = vsel %vm125_vm3, %v126_v32, %v124_v34 }
 0x109   :  { %v134_v40 = vsel %vm132_vm4, %v133_v33, %v131_v35  ;;  %v137_v41 = vmul.f32 0.47942555, %v127_v38 }
 0x10a   :  { %v138_v43 = vmul.f32 0.47942555, %v134_v40 }
 0x10b   :  { %v139_v45 = vsub.f32 %v135_v39, %v137_v41 }
 0x10c   :  { %v140_v46 = vsub.f32 %v136_v42, %v138_v43 }
 0x10d   :  { %v145_v48 = vsel %vm141_vm6, %v139_v45, %v181_v44 }
 0x10e   :  { %v146_v49 = vsel %vm142_vm8, %v140_v46, %v182_v47  ;;  %v159_v50 = vsel %vm157_vm5, %v145_v48, %v108_v16 }
 0x10f   :  { %v160_v51 = vsel %vm158_vm7, %v146_v49, %v110_v18  ;;  %v161_v52 = vmul.f32 30.0, %v159_v50 }
 0x110   :  { %v162_v53 = vmul.f32 30.0, %v160_v51 }
 0x111   :  { %163 = vst [vmem:[#allocation5] sm:$0xff] %v161_v52 }
 0x112   :  { %164 = vst [vmem:[#allocation5 + $0x8] sm:$0xff] %v162_v53 }
 0x113   :  { %235 = shalt.err (!%p232_p12)
}
 0x114   :  { %s236_s5 = scalar_lea.hbm %s309_s3, 256 }
 0x115   :  { %p237_p13 = scmp.ne.s32.totalorder %s309_s3, %s236_s5  ;;  %p240_p0 = scmp.lt.u32.totalorder %s236_s5, %s309_s3 }
 0x117   :  { %p242_p1 = pnand %p240_p0, %p237_p13 }
 0x119   :  { %245 = shalt.err (!%p242_p1)
}
 0x11a   :  { %174 = dma.vmem_to_hbm [thread:$0]  %s172_s1, 256, %s309_s3, [#allocation4]  }
 0x11b   :  { %248 = dma.done.wait [#allocation4], 256  }
 0x11c   :  { %249 = vsyncadd [#allocation4], 4294967040 }
 0x11d   :  { %178 = vsyncpa [#allocation3], 1 }
 0x11e   :  { %179 = vsyncpa [#allocation4], 1 }

</bundles_post_ra>
